<compile_context>
chip_gen: v7x
topology: tpu7x:2x2x1
jax: 0.10.0
libtpu: 0.0.40
codegen_flags: <defaults>
</compile_context>

<pallas_src>
import jax
import jax.numpy as jnp
from jax.experimental import pallas as pl
from jax.experimental.pallas import tpu as pltpu

_SUBLANES = 8                 # f32 sublanes per vreg
_TILE_M = 1024                # row tile cap (multiple of 32 -> fine for all dtypes)
_TILE_N = 1024                # col tile cap (multiple of 128)
_MIN_PALLAS_BYTES = 1 << 20   # below this, a fused jnp multiply beats a kernel launch


# --------------------------------------------------------------------------- kernel
def _neg_scale_kernel(coeff_ref, g_ref, o_ref):
    """o = -coeff * g   (coeff is a (1,1) float32 scalar living in SMEM)."""
    neg_coeff = -coeff_ref[0, 0]
    o_ref[...] = (g_ref[...].astype(jnp.float32) * neg_coeff).astype(o_ref.dtype)


# ------------------------------------------------------------------------- wrappers
def _sublane_pack(dtype):
    """Packed sublane multiple for a dtype: 8 (f32), 16 (bf16), 32 (int8/fp8)."""
    itemsize = jnp.dtype(dtype).itemsize
    return _SUBLANES * max(1, 4 // itemsize)


def _reverse_scale_pallas(g, coeff):
    """Tiled Pallas computation of -coeff * g over a lane-major 2-D view of g."""
    orig_shape = g.shape
    if g.ndim < 2:
        g2d = g.reshape(1, max(1, g.size))
    else:
        g2d = g.reshape(-1, g.shape[-1])          # free: contiguous reshape, no copy
    rows, cols = g2d.shape

    # Block dims must be (8,128)-divisible OR equal to the full extent; ragged edge
    # blocks are masked by Pallas, so no padding is needed.
    tm = rows if rows <= _TILE_M else _TILE_M
    tn = cols if cols <= _TILE_N else _TILE_N

    # Give the v7x megacore (2 TCs) at least two parallel blocks when cheap to do so.
    pack = _sublane_pack(g.dtype)
    if pl.cdiv(rows, tm) * pl.cdiv(cols, tn) == 1 and rows >= 2 * pack:
        tm = pl.cdiv(pl.cdiv(rows, 2), pack) * pack

    grid = (pl.cdiv(rows, tm), pl.cdiv(cols, tn))
    coeff_smem = jnp.reshape(coeff, (1, 1)).astype(jnp.float32)

    out2d = pl.pallas_call(
        _neg_scale_kernel,
        out_shape=jax.ShapeDtypeStruct((rows, cols), g.dtype),
        grid=grid,
        in_specs=[
            pl.BlockSpec(memory_space=pltpu.MemorySpace.SMEM),   # coeff scalar
            pl.BlockSpec((tm, tn), lambda i, j: (i, j)),
        ],
        out_specs=pl.BlockSpec((tm, tn), lambda i, j: (i, j)),
        compiler_params=pltpu.CompilerParams(
            dimension_semantics=("parallel", "parallel"),
            vmem_limit_bytes=48 * 1024 * 1024,
        ),
    )(coeff_smem, g2d)
    return out2d.reshape(orig_shape)


def _reverse_scale(g, coeff):
    if g.size * g.dtype.itemsize < _MIN_PALLAS_BYTES:
        # Tiny gradient: one fused XLA multiply; a standalone kernel is pure overhead.
        return (g.astype(jnp.float32) * (-coeff)).astype(g.dtype)
    return _reverse_scale_pallas(g, coeff)


# ----------------------------------------------------------------------- custom_vjp
@jax.custom_vjp
def _grl(x, coeff):
    return x                                   # forward: identity, zero data movement


def _grl_fwd(x, coeff):
    return x, coeff                            # residual: coeff (may be traced)


def _grl_bwd(coeff, g):
    dx = _reverse_scale(g, coeff)
    return dx, jnp.zeros((), jnp.float32)      # coeff gets a zero cotangent (PyTorch: None)


_grl.defvjp(_grl_fwd, _grl_bwd)


def gradient_reverse(x, coeff=1.0):
    """GradientReverseLayer: identity forward; jax.grad through it yields -coeff * g."""
    coeff = jnp.reshape(jnp.asarray(coeff, dtype=jnp.float32), ())
    return _grl(x, coeff)


# ------------------------------------------------------------------------------ demo
if __name__ == "__main__":
    coeff = 0.5
    key = jax.random.PRNGKey(0)

    # GradientReverseLayer sits on feature activations: (batch=2, hidden=32).
    x_small = jax.random.normal(key, (2, 32), dtype=jnp.float32)

    # Forward: identity (no kernel, no copy).
    y = gradient_reverse(x_small, coeff)
    jax.block_until_ready(y)
    assert y.shape == x_small.shape and y.dtype == x_small.dtype
    assert jnp.array_equal(y, x_small), "forward is not identity"

    # Backward (small -> fused jnp fast path): gradient reversed & scaled by coeff.
    g_small = jax.grad(lambda v: jnp.sum(gradient_reverse(v, coeff)))(x_small)
    jax.block_until_ready(g_small)
    assert jnp.allclose(g_small, -coeff * jnp.ones_like(x_small), atol=1e-6)

    # Exercise the Pallas backward kernel directly on small shapes (full-dim blocks,
    # non-128-aligned last dim, 3-D input) to prove the kernel compiles and runs.
    for shape in [(2, 32), (8, 4, 40)]:
        g_in = jax.random.normal(jax.random.PRNGKey(1), shape, dtype=jnp.float32)
        out = _reverse_scale_pallas(g_in, jnp.float32(coeff))
        jax.block_until_ready(out)
        assert jnp.allclose(out, -coeff * g_in, atol=1e-6), f"pallas bwd wrong for {shape}"

    # End-to-end grad through the Pallas kernel (>= 1 MiB threshold) with a traced
    # coeff, under jit -- one compile regardless of the coeff schedule value.
    x_big = jax.random.normal(jax.random.PRNGKey(2), (256, 1024), dtype=jnp.float32)
    loss = lambda v, c: jnp.sum(gradient_reverse(v, c))
    g_big = jax.jit(jax.grad(loss))(x_big, jnp.float32(coeff))
    jax.block_until_ready(g_big)
    assert jnp.allclose(g_big, -coeff * jnp.ones_like(x_big), atol=1e-6)

    print("KERNEL_OK")
</pallas_src>

<mosaic_0001>
module attributes {stable_mosaic.version = 11 : i64} {
  func.func @_neg_scale_kernel(%arg0: i32, %arg1: i32, %arg2: memref<1x1xf32, #tpu.memory_space<smem>>, %arg3: memref<2x32xf32, #tpu.memory_space<vmem>>, %arg4: memref<2x32xf32, #tpu.memory_space<vmem>>) attributes {dimension_semantics = [#tpu.dimension_semantics<parallel>, #tpu.dimension_semantics<parallel>], iteration_bounds = array<i64: 1, 1>, scalar_prefetch = 0 : i64, scratch_operands = 0 : i64, tpu.core_type = #tpu.core_type<tc>, window_params = [{transform_indices = @transform_0, window_bounds = array<i64: 1, 1>}, {transform_indices = @transform_1, window_bounds = array<i64: 2, 32>}, {transform_indices = @transform_2, window_bounds = array<i64: 2, 32>}]} {
    %c0 = arith.constant 0 : index
    %c0_0 = arith.constant 0 : index
    %0 = memref.load %arg2[%c0, %c0_0] : memref<1x1xf32, #tpu.memory_space<smem>>
    %cst = arith.constant 0.000000e+00 : f32
    %1 = arith.subf %cst, %0 : f32
    %c0_1 = arith.constant 0 : index
    %c0_2 = arith.constant 0 : index
    %2 = vector.load %arg3[%c0_1, %c0_2] : memref<2x32xf32, #tpu.memory_space<vmem>>, vector<2x32xf32>
    %3 = vector.broadcast %1 : f32 to vector<2x32xf32>
    %4 = arith.mulf %2, %3 : vector<2x32xf32>
    %c0_3 = arith.constant 0 : index
    %c0_4 = arith.constant 0 : index
    %5 = vector.load %arg4[%c0_3, %c0_4] : memref<2x32xf32, #tpu.memory_space<vmem>>, vector<2x32xf32>
    tpu.vector_store %arg4[%c0_3, %c0_4], %4 {strides = array<i32>} : memref<2x32xf32, #tpu.memory_space<vmem>>, vector<2x32xf32>,
    return
  }
  func.func @transform_0(%arg0: i32, %arg1: i32) -> (i32, i32) {
    %c0_i32 = arith.constant 0 : i32
    %c0_i32_0 = arith.constant 0 : i32
    %c0_i32_1 = arith.constant 0 : i32
    return %c0_i32, %c0_i32_0 : i32, i32
  }
  func.func @transform_1(%arg0: i32, %arg1: i32) -> (i32, i32) {
    %c0_i32 = arith.constant 0 : i32
    return %arg0, %arg1 : i32, i32
  }
  func.func @transform_2(%arg0: i32, %arg1: i32) -> (i32, i32) {
    %c0_i32 = arith.constant 0 : i32
    return %arg0, %arg1 : i32, i32
  }
}

</mosaic_0001>

<bundles_post_ra>
// kernel: tpu_custom_call.1
= control target key start
LH: loop header
LB: loop body
LE: loop exit
PB: predicated region body
PF: predicated region fallthrough
CT: control target
= control target key end

     0   :  { %s93_s0 = inlined_call_operand.<no memory space> [shape: f32[1,1], index: 0, kind: input, shape index: {}]   ;;  %s94_s1 = inlined_call_operand.vmem [shape: f32[2,32], index: 1, kind: input, shape index: {}]   ;;  %s95_s2 = inlined_call_operand.hbm [shape: f32[2,32], index: 2, kind: output, shape index: {}]  }
   0x1   :  { %s14_s11 = ssub.f32 0.0, %s93_s0  ;;  %v15_v0 = vld [vmem:[%s94_s1] sm:$0x3] }
   0x2   :  { %8 = vsyncpa [#allocation4], 0  ;;  %vm18_vm0 = vcmask 254976   ;;  %s59_s14 = smov [#allocation3]  }
   0x3   :  { %v16_v1 = vstv %s14_s11  ;;  %s26_s15 = sshll.u32 %s59_s14, 4  ;;  %s27_s15 = int_to_ptr.vmem [resolvable:$true] %s26_s15 }
   0x4   :  { %v17_v2 = vmul.f32 %v16_v1, %v15_v0  ;;  %s35_s16 = scalar_lea.vmem %s27_s15, 32  ;;  %p40_p1 = scmp.lt.s32.totalorder %s27_s15, %s27_s15 }
   0x5   :  { %p36_p0 = scmp.ne.s32.totalorder %s27_s15, %s35_s16  ;;  %p41_p2 = scmp.lt.s32.totalorder %s35_s16, %s35_s16 }
   0x6   :  { %19 = vst.msk [vmem:[#allocation3] sm:$0x3] %vm18_vm0, %v17_v2 }
   0x7   :  { %p42_p3 = por %p41_p2, %p40_p1 }
   0x9   :  { %p43_p4 = pnand %p42_p3, %p36_p0 }
   0xb   :  { %46 = shalt.err (!%p43_p4)
}
   0xc   :  { %s47_s18 = scalar_lea.hbm %s95_s2, 32 }
   0xd   :  { %p48_p5 = scmp.ne.s32.totalorder %s95_s2, %s47_s18  ;;  %p51_p6 = scmp.lt.u32.totalorder %s47_s18, %s95_s2 }
   0xf   :  { %p53_p7 = pnand %p51_p6, %p48_p5 }
  0x11   :  { %56 = shalt.err (!%p53_p7)
}
  0x12   :  { %29 = dma.vmem_to_hbm [thread:$0]  %s27_s15, 32, %s95_s2, [#allocation4]  }
  0x13   :  { %57 = dma.done.wait [#allocation4], 32  }
  0x14   :  { %58 = vsyncadd [#allocation4], 4294967264 }
  0x15   :  { %33 = vsyncpa [#allocation4], 1 }

</bundles_post_ra>
